<compile_context>
chip_gen: v7x
topology: tpu7x:2x2x1
jax: 0.10.0
libtpu: 0.0.40
codegen_flags: <defaults>
</compile_context>

<pallas_src>
import functools
import math

import jax
import jax.numpy as jnp
from jax import lax
from jax.experimental import pallas as pl
from jax.experimental.pallas import tpu as pltpu


# --------------------------------------------------------------------------- #
# Kernel: per-row off-diagonal sum of exp((s - 1) / T) for the Gram matrix of
# the pre-normalized, concatenated views.
# --------------------------------------------------------------------------- #
def _ntxent_offdiag_sumexp_kernel(xr_ref, xc_ref, out_ref, acc_ref, *,
                                  tm, tn, inv_t, n_valid, n_padded):
    i = pl.program_id(0)
    j = pl.program_id(1)
    nj = pl.num_programs(1)

    @pl.when(j == 0)
    def _init():
        acc_ref[...] = jnp.zeros_like(acc_ref)

    # Gram tile on the MXU: rows · colsᵀ without materializing a transpose.
    # Operands are already normalized + cast in the wrapper; accumulate in f32.
    s = lax.dot_general(xr_ref[...], xc_ref[...],
                        dimension_numbers=(((1,), (1,)), ((), ())),
                        preferred_element_type=jnp.float32)          # (tm, tn)

    # Fixed-max shift (row max of a normalized Gram matrix is 1 → max logit 1/T).
    e = jnp.exp((s - 1.0) * inv_t)

    row0 = i * tm
    col0 = j * tn

    if n_padded != n_valid:
        # Static branch: only emitted when row padding exists. Padded rows appear
        # as columns of real rows and must not contribute to the denominator.
        col_g = col0 + lax.broadcasted_iota(jnp.int32, (tm, tn), 1)
        e = jnp.where(col_g < n_valid, e, 0.0)

    # Only ~N/TN tiles intersect the global diagonal; gate the mask work.
    hits_diag = jnp.logical_and(row0 < col0 + tn, col0 < row0 + tm)

    @pl.when(hits_diag)
    def _acc_masked():
        # global diagonal: (i*tm + r) == (j*tn + c)  <=>  (c - r) == (row0 - col0)
        delta = (lax.broadcasted_iota(jnp.int32, (tm, tn), 1)
                 - lax.broadcasted_iota(jnp.int32, (tm, tn), 0))
        acc_ref[...] += jnp.where(delta == (row0 - col0), 0.0, e)

    @pl.when(jnp.logical_not(hits_diag))
    def _acc_plain():
        acc_ref[...] += e                       # lane-dense VPU adds, no XLU

    @pl.when(j == nj - 1)
    def _finalize():
        # single cross-lane reduce per row tile
        out_ref[...] = jnp.sum(acc_ref[...], axis=1, keepdims=True)


# --------------------------------------------------------------------------- #
# Helpers
# --------------------------------------------------------------------------- #
def _round_up(x, m):
    return ((x + m - 1) // m) * m


def _lcm(a, b):
    return a * b // math.gcd(a, b)


def _pick_tile(n, target, gran):
    """Tile size: min(roundup(n, gran), target), target rounded down to gran."""
    target = max(gran, (target // gran) * gran)
    if n <= target:
        return _round_up(n, gran)
    return target


# --------------------------------------------------------------------------- #
# Wrapper: NTXentLossWithP2.forward (memory_bank_size = 0 / SimCLR branch)
# --------------------------------------------------------------------------- #
def ntxent_loss_with_p2(out0, out1, *, temperature=0.5, parameter_neg=1,
                        tm=None, tn=None, operand_dtype=jnp.bfloat16):
    if abs(float(temperature)) < 1e-8:
        raise ValueError(f"Illegal temperature: abs({temperature}) < 1e-8")
    B, D = out0.shape
    N = 2 * B
    inv_t = 1.0 / float(temperature)

    # ---- normalize once in f32 (torch F.normalize: x / max(||x||, 1e-12)) ----
    x0 = out0.astype(jnp.float32)
    x1 = out1.astype(jnp.float32)
    x0n = x0 * lax.rsqrt(jnp.maximum(jnp.sum(x0 * x0, axis=1, keepdims=True), 1e-24))
    x1n = x1 * lax.rsqrt(jnp.maximum(jnp.sum(x1 * x1, axis=1, keepdims=True), 1e-24))
    xcat = jnp.concatenate([x0n, x1n], axis=0)                 # (N, D) f32

    # ---- analytic diagonal / positive logits in f32 (tiny, stays in wrapper) ----
    diag = inv_t * jnp.sum(xcat * xcat, axis=1)                # (N,)
    pos_half = inv_t * jnp.sum(x0n * x1n, axis=1)              # (B,)
    pos = jnp.concatenate([pos_half, pos_half])                # (N,)  partner logit

    # sim_pos = (1/T - diag)^p, specialized for small integer exponents
    # (repeated multiply is cheaper than exp(p*log(x)) and sign-safe).
    base = inv_t - diag
    p = float(parameter_neg)
    if p == int(p) and abs(int(p)) <= 8:
        ip = abs(int(p))
        sim_pos = jnp.ones_like(base)
        for _ in range(ip):
            sim_pos = sim_pos * base
        if int(p) < 0:
            sim_pos = 1.0 / sim_pos
    else:
        # TODO(synk): non-integer exponents keep torch.pow semantics (NaN if fp
        # rounding makes the base slightly negative).
        sim_pos = jnp.power(base, p)

    # ---- tiling / padding ----
    opsize = jnp.dtype(operand_dtype).itemsize
    gran = 16 if opsize < 4 else 8                     # bf16 sublane packing on v5e
    Dp = _round_up(D, 128)                             # lane-aligned MXU contraction
    TM = _pick_tile(N, 512, gran) if tm is None else tm
    TN = _pick_tile(N, 512, gran) if tn is None else tn

    def footprint(tm_, tn_):
        return (2 * (tm_ + tn_) * Dp * opsize          # double-buffered input tiles
                + 4 * tm_ * tn_ * 4                    # acc scratch + s/e temporaries
                + 2 * tm_ * 128 * 4)                   # output tile + slack

    try:
        vmem_phys = int(pltpu.get_tpu_info().vmem_capacity_bytes)
    except Exception:
        vmem_phys = 64 * 1024 * 1024                   # conservative (v7x-sized)
    budget = max(8 * 1024 * 1024, int(vmem_phys * 0.6))

    if tm is None or tn is None:
        # Shrink TN first — TM is the reuse lever for the streamed column operand.
        while footprint(TM, TN) > budget and TN > 128:
            TN = max(128, (TN // 2 // gran) * gran)
        while footprint(TM, TN) > budget and TM > 128:
            TM = max(128, (TM // 2 // gran) * gran)

    Np = _round_up(N, _lcm(TM, TN))
    xk = jnp.pad(xcat.astype(operand_dtype), ((0, Np - N), (0, Dp - D)))  # (Np, Dp)

    vmem_limit = int(min(max(2 * footprint(TM, TN), 8 * 1024 * 1024), budget))

    kernel = functools.partial(
        _ntxent_offdiag_sumexp_kernel,
        tm=TM, tn=TN, inv_t=inv_t, n_valid=N, n_padded=Np)

    sumexp = pl.pallas_call(
        kernel,
        out_shape=jax.ShapeDtypeStruct((Np, 1), jnp.float32),
        grid_spec=pltpu.PrefetchScalarGridSpec(
            num_scalar_prefetch=0,
            grid=(Np // TM, Np // TN),
            in_specs=[
                pl.BlockSpec((TM, Dp), lambda i, j: (i, 0)),   # row tile
                pl.BlockSpec((TN, Dp), lambda i, j: (j, 0)),   # streamed column tile
            ],
            out_specs=pl.BlockSpec((TM, 1), lambda i, j: (i, 0)),
            scratch_shapes=[pltpu.VMEM((TM, TN), jnp.float32)],  # lane-dense acc
        ),
        compiler_params=pltpu.CompilerParams(
            dimension_semantics=("parallel", "arbitrary"),
            vmem_limit_bytes=vmem_limit,
        ),
    )(xk, xk)

    sumexp = sumexp[:N, 0]                                       # drop padded rows
    # Off-diagonal log-sum-exp with fixed max 1/T; tiny floor guards the
    # (unrealistic) T < ~0.02 underflow case against log(0).
    lse = inv_t + jnp.log(jnp.maximum(sumexp, 1e-37))            # (N,)

    # NLLLoss(reduction='mean'): loss = -mean_i( sim_pos[i] * logsoftmax[i, label_i] )
    per_row = sim_pos * (pos - lse)
    return -jnp.sum(per_row) / N


# --------------------------------------------------------------------------- #
# Pure-JAX f32 reference matching the PyTorch forward (no memory bank)
# --------------------------------------------------------------------------- #
def ntxent_loss_ref(out0, out1, *, temperature=0.5, parameter_neg=1):
    B, _ = out0.shape
    N = 2 * B
    x0 = out0 / jnp.maximum(jnp.linalg.norm(out0, axis=1, keepdims=True), 1e-12)
    x1 = out1 / jnp.maximum(jnp.linalg.norm(out1, axis=1, keepdims=True), 1e-12)
    x = jnp.concatenate([x0, x1], axis=0)
    logits = (x @ x.T) / temperature
    diag_vals = jnp.diag(logits)[:, None]
    pos_idx = (jnp.arange(N) + B) % N
    pos_vals = logits[jnp.arange(N), pos_idx][:, None]
    masked = jnp.where(jnp.eye(N, dtype=bool), -jnp.inf, logits)
    lse = jax.scipy.special.logsumexp(masked, axis=1, keepdims=True)
    sim_pos = jnp.power(1.0 / temperature - diag_vals, float(parameter_neg))
    per_row = sim_pos * (pos_vals - lse)
    return -jnp.mean(per_row)


if __name__ == "__main__":
    B, D = 16, 32
    key = jax.random.PRNGKey(0)
    k0, k1 = jax.random.split(key)
    out0 = jax.random.normal(k0, (B, D), dtype=jnp.float32)
    out1 = jax.random.normal(k1, (B, D), dtype=jnp.float32)

    # 1) Module defaults (temperature=0.5, parameter_neg=1), auto tiles, bf16 stream.
    loss = jax.block_until_ready(ntxent_loss_with_p2(out0, out1))
    ref = ntxent_loss_ref(out0, out1)
    assert jnp.allclose(loss, ref, atol=1e-5), (loss, ref)

    # 2) Tiled online accumulation (grid 2x2), bf16 operands, parameter_neg=0
    #    (non-degenerate loss; loose bf16 tolerance).
    loss2 = jax.block_until_ready(
        ntxent_loss_with_p2(out0, out1, parameter_neg=0, tm=16, tn=16))
    ref2 = ntxent_loss_ref(out0, out1, parameter_neg=0)
    assert jnp.allclose(loss2, ref2, rtol=2e-2, atol=3e-2), (loss2, ref2)

    # 3) Tiled path (grid 4x2) with f32 MXU operands: tight tolerance.
    loss3 = jax.block_until_ready(
        ntxent_loss_with_p2(out0, out1, parameter_neg=0, tm=8, tn=16,
                            operand_dtype=jnp.float32))
    assert jnp.allclose(loss3, ref2, rtol=1e-3, atol=5e-4), (loss3, ref2)

    # 4) Awkward N (padded rows + masked padded columns), f32 operands.
    B4, D4 = 10, 40
    o0 = jax.random.normal(jax.random.PRNGKey(1), (B4, D4), dtype=jnp.float32)
    o1 = jax.random.normal(jax.random.PRNGKey(2), (B4, D4), dtype=jnp.float32)
    loss4 = jax.block_until_ready(
        ntxent_loss_with_p2(o0, o1, parameter_neg=0, tm=16, tn=16,
                            operand_dtype=jnp.float32))
    ref4 = ntxent_loss_ref(o0, o1, parameter_neg=0)
    assert jnp.allclose(loss4, ref4, rtol=1e-3, atol=5e-4), (loss4, ref4)

    print("KERNEL_OK")
</pallas_src>

<mosaic_0001>
module attributes {stable_mosaic.version = 11 : i64} {
  func.func @_ntxent_offdiag_sumexp_kernel(%arg0: i32, %arg1: i32, %arg2: memref<32x128xbf16, #tpu.memory_space<vmem>>, %arg3: memref<32x128xbf16, #tpu.memory_space<vmem>>, %arg4: memref<32x1xf32, #tpu.memory_space<vmem>>, %arg5: memref<32x32xf32, #tpu.memory_space<vmem>>) attributes {dimension_semantics = [#tpu.dimension_semantics<parallel>, #tpu.dimension_semantics<arbitrary>], iteration_bounds = array<i64: 1, 1>, scalar_prefetch = 0 : i64, scratch_operands = 1 : i64, tpu.core_type = #tpu.core_type<tc>, window_params = [{transform_indices = @transform_0, window_bounds = array<i64: 32, 128>}, {transform_indices = @transform_1, window_bounds = array<i64: 32, 128>}, {transform_indices = @transform_2, window_bounds = array<i64: 32, 1>}]} {
    %c0_i32 = arith.constant 0 : i32
    %0 = arith.cmpi eq, %arg1, %c0_i32 : i32
    %1 = arith.extui %0 : i1 to i32
    %c0_i32_0 = arith.constant 0 : i32
    %2 = arith.cmpi ne, %1, %c0_i32_0 : i32
    scf.if %2 {
      %cst_13 = arith.constant 0.000000e+00 : f32
      %26 = vector.broadcast %cst_13 : f32 to vector<32x32xf32>
      %c0_14 = arith.constant 0 : index
      %c0_15 = arith.constant 0 : index
      %27 = vector.load %arg5[%c0_14, %c0_15] : memref<32x32xf32, #tpu.memory_space<vmem>>, vector<32x32xf32>
      tpu.vector_store %arg5[%c0_14, %c0_15], %26 {strides = array<i32>} : memref<32x32xf32, #tpu.memory_space<vmem>>, vector<32x32xf32>,
    } else {
    }
    %c0 = arith.constant 0 : index
    %c0_1 = arith.constant 0 : index
    %3 = vector.load %arg2[%c0, %c0_1] : memref<32x128xbf16, #tpu.memory_space<vmem>>, vector<32x128xbf16>
    %c0_2 = arith.constant 0 : index
    %c0_3 = arith.constant 0 : index
    %4 = vector.load %arg3[%c0_2, %c0_3] : memref<32x128xbf16, #tpu.memory_space<vmem>>, vector<32x128xbf16>
    %cst = arith.constant dense<0.000000e+00> : vector<32x32xf32>
    %5 = tpu.matmul %3, %4, %cst {dimension_numbers = #tpu.dot_dimension_numbers<[1], [1], [0], [0], [0, 0, 1, 0], [], []>} : vector<32x128xbf16>, vector<32x128xbf16>, vector<32x32xf32> -> vector<32x32xf32>
    %cst_4 = arith.constant 1.000000e+00 : f32
    %6 = vector.broadcast %cst_4 : f32 to vector<32x32xf32>
    %7 = arith.subf %5, %6 : vector<32x32xf32>
    %cst_5 = arith.constant 2.000000e+00 : f32
    %8 = vector.broadcast %cst_5 : f32 to vector<32x32xf32>
    %9 = arith.mulf %7, %8 : vector<32x32xf32>
    %10 = math.exp %9 : vector<32x32xf32>
    %c32_i32 = arith.constant 32 : i32
    %11 = arith.muli %arg0, %c32_i32 : i32
    %c32_i32_6 = arith.constant 32 : i32
    %12 = arith.muli %arg1, %c32_i32_6 : i32
    %c32_i32_7 = arith.constant 32 : i32
    %13 = arith.addi %12, %c32_i32_7 : i32
    %14 = arith.cmpi slt, %11, %13 : i32
    %c32_i32_8 = arith.constant 32 : i32
    %15 = arith.addi %11, %c32_i32_8 : i32
    %16 = arith.cmpi slt, %12, %15 : i32
    %17 = arith.andi %14, %16 : i1
    %18 = arith.extui %17 : i1 to i32
    %c0_i32_9 = arith.constant 0 : i32
    %19 = arith.cmpi ne, %18, %c0_i32_9 : i32
    scf.if %19 {
      %26 = tpu.iota {dimensions = array<i32: 1>} : vector<32x32xi32>
      %27 = tpu.iota {dimensions = array<i32: 0>} : vector<32x32xi32>
      %28 = arith.subi %26, %27 : vector<32x32xi32>
      %c0_13 = arith.constant 0 : index
      %c0_14 = arith.constant 0 : index
      %29 = vector.load %arg5[%c0_13, %c0_14] : memref<32x32xf32, #tpu.memory_space<vmem>>, vector<32x32xf32>
      %30 = arith.subi %11, %12 : i32
      %31 = vector.broadcast %30 : i32 to vector<32x32xi32>
      %32 = arith.cmpi eq, %28, %31 : vector<32x32xi32>
      %cst_15 = arith.constant 0.000000e+00 : f32
      %33 = vector.broadcast %cst_15 : f32 to vector<32x32xf32>
      %34 = arith.select %32, %33, %10 : vector<32x32xi1>, vector<32x32xf32>
      %35 = arith.addf %29, %34 : vector<32x32xf32>
      %c0_16 = arith.constant 0 : index
      %c0_17 = arith.constant 0 : index
      %36 = vector.load %arg5[%c0_16, %c0_17] : memref<32x32xf32, #tpu.memory_space<vmem>>, vector<32x32xf32>
      tpu.vector_store %arg5[%c0_16, %c0_17], %35 {strides = array<i32>} : memref<32x32xf32, #tpu.memory_space<vmem>>, vector<32x32xf32>,
    } else {
    }
    %true = arith.constant true
    %20 = arith.xori %17, %true : i1
    %21 = arith.extui %20 : i1 to i32
    %c0_i32_10 = arith.constant 0 : i32
    %22 = arith.cmpi ne, %21, %c0_i32_10 : i32
    scf.if %22 {
      %c0_13 = arith.constant 0 : index
      %c0_14 = arith.constant 0 : index
      %26 = vector.load %arg5[%c0_13, %c0_14] : memref<32x32xf32, #tpu.memory_space<vmem>>, vector<32x32xf32>
      %27 = arith.addf %26, %10 : vector<32x32xf32>
      %c0_15 = arith.constant 0 : index
      %c0_16 = arith.constant 0 : index
      %28 = vector.load %arg5[%c0_15, %c0_16] : memref<32x32xf32, #tpu.memory_space<vmem>>, vector<32x32xf32>
      tpu.vector_store %arg5[%c0_15, %c0_16], %27 {strides = array<i32>} : memref<32x32xf32, #tpu.memory_space<vmem>>, vector<32x32xf32>,
    } else {
    }
    %c0_i32_11 = arith.constant 0 : i32
    %23 = arith.cmpi eq, %arg1, %c0_i32_11 : i32
    %24 = arith.extui %23 : i1 to i32
    %c0_i32_12 = arith.constant 0 : i32
    %25 = arith.cmpi ne, %24, %c0_i32_12 : i32
    scf.if %25 {
      %c0_13 = arith.constant 0 : index
      %c0_14 = arith.constant 0 : index
      %26 = vector.load %arg5[%c0_13, %c0_14] : memref<32x32xf32, #tpu.memory_space<vmem>>, vector<32x32xf32>
      %cst_15 = arith.constant dense<0.000000e+00> : vector<32xf32>
      %27 = vector.multi_reduction <add>, %26, %cst_15 [1] : vector<32x32xf32> to vector<32xf32>
      %28 = vector.shape_cast %27 : vector<32xf32> to vector<32x1xf32>
      %c0_16 = arith.constant 0 : index
      %c0_17 = arith.constant 0 : index
      %29 = vector.load %arg4[%c0_16, %c0_17] : memref<32x1xf32, #tpu.memory_space<vmem>>, vector<32x1xf32>
      tpu.vector_store %arg4[%c0_16, %c0_17], %28 {strides = array<i32>} : memref<32x1xf32, #tpu.memory_space<vmem>>, vector<32x1xf32>,
    } else {
    }
    return
  }
  func.func @transform_0(%arg0: i32, %arg1: i32) -> (i32, i32) {
    %c0_i32 = arith.constant 0 : i32
    %c0_i32_0 = arith.constant 0 : i32
    return %arg0, %c0_i32 : i32, i32
  }
  func.func @transform_1(%arg0: i32, %arg1: i32) -> (i32, i32) {
    %c0_i32 = arith.constant 0 : i32
    %c0_i32_0 = arith.constant 0 : i32
    return %arg1, %c0_i32 : i32, i32
  }
  func.func @transform_2(%arg0: i32, %arg1: i32) -> (i32, i32) {
    %c0_i32 = arith.constant 0 : i32
    %c0_i32_0 = arith.constant 0 : i32
    return %arg0, %c0_i32 : i32, i32
  }
}

</mosaic_0001>

<bundles_post_ra>
// kernel: tpu_custom_call.1
= control target key start
LH: loop header
LB: loop body
LE: loop exit
PB: predicated region body
PF: predicated region fallthrough
CT: control target
= control target key end

     0   :  { %7 = vsyncpa [#allocation4], 0  ;;  %s390_s0 = inlined_call_operand.hbm [shape: bf16[32,128], index: 0, kind: input, shape index: {}]   ;;  %s391_s1 = inlined_call_operand.hbm [shape: bf16[32,128], index: 1, kind: input, shape index: {}]   ;;  %s392_s2 = inlined_call_operand.vmem [shape: f32[32,1], index: 2, kind: output, shape index: {}]  }
   0x1   :  { %8 = vsyncpa [#allocation6], 0  ;;  %s322_s9 = smov [#allocation3]   ;;  %s274_s13 = scalar_lea.hbm %s390_s0, 256 }
   0x2   :  { %s14_s10 = sshll.u32 %s322_s9, 4  ;;  %p275_p0 = scmp.ne.s32.totalorder %s390_s0, %s274_s13  ;;  %s15_s10 = int_to_ptr.vmem [resolvable:$true] %s14_s10 }
   0x3   :  { %p278_p1 = scmp.lt.u32.totalorder %s274_s13, %s390_s0 }
   0x5   :  { %p280_p2 = pnand %p278_p1, %p275_p0 }
   0x7   :  { %283 = shalt.err (!%p280_p2)
}
   0x8   :  { %s284_s18 = scalar_lea.vmem %s15_s10, 256  ;;  %p289_p4 = scmp.lt.s32.totalorder %s15_s10, %s15_s10 }
   0x9   :  { %p285_p3 = scmp.ne.s32.totalorder %s15_s10, %s284_s18  ;;  %p290_p5 = scmp.lt.s32.totalorder %s284_s18, %s284_s18 }
   0xb   :  { %p291_p6 = por %p290_p5, %p289_p4 }
   0xd   :  { %p292_p7 = pnand %p291_p6, %p285_p3 }
   0xf   :  { %295 = shalt.err (!%p292_p7)
}
  0x10   :  { %s323_s19 = smov 64   ;;  %s324_s20 = smov 4  }
  0x11   :  { %20 = dma.hbm_to_vmem [thread:$0]  %s390_s0, 256, %s15_s10, [#allocation4], %s323_s19, %s323_s19, %s324_s20  }
  0x12   :  { %s325_s23 = smov [#allocation5]   ;;  %s296_s27 = scalar_lea.hbm %s391_s1, 256 }
  0x13   :  { %s26_s24 = sshll.u32 %s325_s23, 4  ;;  %p297_p8 = scmp.ne.s32.totalorder %s391_s1, %s296_s27  ;;  %s27_s24 = int_to_ptr.vmem [resolvable:$true] %s26_s24 }
  0x14   :  { %p300_p9 = scmp.lt.u32.totalorder %s296_s27, %s391_s1 }
  0x16   :  { %p302_p10 = pnand %p300_p9, %p297_p8 }
  0x18   :  { %305 = shalt.err (!%p302_p10)
}
  0x19   :  { %s306_s4 = scalar_lea.vmem %s27_s24, 256  ;;  %p311_p12 = scmp.lt.s32.totalorder %s27_s24, %s27_s24 }
  0x1a   :  { %p307_p11 = scmp.ne.s32.totalorder %s27_s24, %s306_s4  ;;  %p312_p13 = scmp.lt.s32.totalorder %s306_s4, %s306_s4 }
  0x1c   :  { %p313_p0 = por %p312_p13, %p311_p12 }
  0x1e   :  { %p314_p1 = pnand %p313_p0, %p307_p11 }
  0x20   :  { %317 = shalt.err (!%p314_p1)
}
  0x21   :  { %32 = dma.hbm_to_vmem [thread:$0]  %s391_s1, 256, %s27_s24, [#allocation6], %s323_s19, %s323_s19, %s324_s20  }
  0x22   :  { %318 = dma.done.wait [#allocation4], 256  }
  0x23   :  { %319 = vsyncadd [#allocation4], 4294967040 }
  0x24   :  { %320 = dma.done.wait [#allocation6], 256  }
  0x25   :  { %321 = vsyncadd [#allocation6], 4294967040  ;;  %vm44_vm0 = vcmask 261120   ;;  %v326_v0 = vmov 0.0   ;;  %v262_v1 = vld [vmem:[#allocation5] sm:$0xff]   ;;  %v263_v2 = vld [vmem:[#allocation5 + $0x8] sm:$0xff]   ;;  %v156_v5 = vlaneseq }
  0x26   :  { %47 = vst.msk [vmem:[#allocation2 + $0x10] sm:$0xff] %vm44_vm0, %v326_v0  ;;  %45 = vst.msk [vmem:[#allocation2] sm:$0xff] %vm44_vm0, %v326_v0  ;;  %249 = vmatprep.subr.bf16.mxu0 %v262_v1  ;;  %v264_v3 = vld [vmem:[#allocation3] sm:$0xff]   ;;  %v265_v4 = vld [vmem:[#allocation3 + $0x8] sm:$0xff]   ;;  %vm226_vm5 = vcmask 7168  }
  0x27   :  { %46 = vst.msk [vmem:[#allocation2 + $0x8] sm:$0xff] %vm44_vm0, %v326_v0  ;;  %48 = vst.msk [vmem:[#allocation2 + $0x18] sm:$0xff] %vm44_vm0, %v326_v0  ;;  %250 = vmatpush3.bf16.xpose.msra.mxu0 %v262_v1  ;;  %253 = vmatprep.mubr.bf16.mxu0 %v264_v3  ;;  %v159_v12 = vshrl.u32 %v156_v5, 7  ;;  %v157_v21 = vand.u32 127, %v156_v5 }
  0x28   :  { %251 = vmatprep.subr.bf16.mxu0 %v263_v2 }
  0x29   :  { %v161_v22 = vadd.s32 16, %v159_v12  ;;  %v162_v25 = vadd.s32 24, %v159_v12  ;;  %v160_v26 = vadd.s32 8, %v159_v12  ;;  %v163_v28 = vsub.s32 %v157_v21, %v159_v12 }
  0x2b   :  { %v165_v27 = vsub.s32 %v157_v21, %v161_v22  ;;  %v166_v29 = vsub.s32 %v157_v21, %v162_v25  ;;  %v164_v30 = vsub.s32 %v157_v21, %v160_v26  ;;  %vm173_vm2 = vcmp.eq.s32.totalorder %v163_v28, 0 }
  0x2d   :  { %vm175_vm1 = vcmp.eq.s32.totalorder %v165_v27, 0  ;;  %v169_v31 = vld [vmem:[#allocation2 + $0x10] sm:$0xff]  ;;  %v167_v33 = vld [vmem:[#allocation2] sm:$0xff]  ;;  %vm176_vm3 = vcmp.eq.s32.totalorder %v166_v29, 0  ;;  %vm174_vm4 = vcmp.eq.s32.totalorder %v164_v30, 0 }
  0x2e   :  { %v170_v36 = vld [vmem:[#allocation2 + $0x18] sm:$0xff]  ;;  %v168_v40 = vld [vmem:[#allocation2 + $0x8] sm:$0xff] }
  0x2f   :  { %252 = vmatpush3.bf16.xpose.msra.mxu0 %v263_v2 }
  0x36   :  { %254 = vmatmul.mubr.bf16.vlgmr.msra.gmra.mrb[0].mxu0 %v265_v4 }
 0x109   :  { %v255_v6 = vpop.f32.mrb[0].mxu0 }
 0x10a   :  { %v243_v7 = vadd.f32 -1.0, %v255_v6  ;;  %v115_v8 = vpop.f32.mrb[1].mxu0 }
 0x10b   :  { %v241_v9 = vadd.f32 -1.0, %v115_v8  ;;  %v256_v10 = vpop.f32.mrb[2].mxu0 }
 0x10c   :  { %v136_v11 = vmul.f32 2.0, %v243_v7  ;;  %v244_v13 = vadd.f32 -1.0, %v256_v10  ;;  %v118_v14 = vpop.f32.mrb[3].mxu0 }
 0x10d   :  { %v134_v15 = vmul.f32 2.0, %v241_v9  ;;  %v242_v16 = vadd.f32 -1.0, %v118_v14 }
 0x10e   :  { %v142_v17 = vmul.f32 1.442695, %v136_v11  ;;  %v137_v18 = vmul.f32 2.0, %v244_v13 }
 0x10f   :  { %v138_v19 = vmul.f32 1.442695, %v134_v15  ;;  %v135_v20 = vmul.f32 2.0, %v242_v16 }
 0x110   :  { %266 = vpow2.f32 %v142_v17  ;;  %v144_v23 = vmul.f32 1.442695, %v137_v18 }
 0x111   :  { %268 = vpow2.f32 %v138_v19  ;;  %v140_v24 = vmul.f32 1.442695, %v135_v20 }
 0x112   :  { %270 = vpow2.f32 %v144_v23 }
 0x113   :  { %272 = vpow2.f32 %v140_v24 }
 0x11a   :  { %v267_v32 = vpop.eup %266 }
 0x11b   :  { %v269_v34 = vpop.eup %268  ;;  %v179_v35 = vsel %vm175_vm1, 0.0, %v267_v32 }
 0x11c   :  { %v271_v37 = vpop.eup %270  ;;  %v183_v38 = vadd.f32 %v179_v35, %v169_v31  ;;  %v177_v39 = vsel %vm173_vm2, 0.0, %v269_v34 }
 0x11d   :  { %v273_v41 = vpop.eup %272  ;;  %v181_v42 = vadd.f32 %v177_v39, %v167_v33  ;;  %v180_v43 = vsel %vm176_vm3, 0.0, %v271_v37 }
 0x11e   :  { %188 = vst.msk [vmem:[#allocation2 + $0x10] sm:$0xff] %vm44_vm0, %v183_v38  ;;  %v184_v44 = vadd.f32 %v180_v43, %v170_v36  ;;  %v178_v45 = vsel %vm174_vm4, 0.0, %v273_v41 }
 0x11f   :  { %186 = vst.msk [vmem:[#allocation2] sm:$0xff] %vm44_vm0, %v181_v42  ;;  %v182_v46 = vadd.f32 %v178_v45, %v168_v40 }
 0x120   :  { %189 = vst.msk [vmem:[#allocation2 + $0x18] sm:$0xff] %vm44_vm0, %v184_v44 }
 0x121   :  { %187 = vst.msk [vmem:[#allocation2 + $0x8] sm:$0xff] %vm44_vm0, %v182_v46 }
 0x125   :  { %v211_v47 = vld [vmem:[#allocation2 + $0x10] sm:$0xff] }
 0x126   :  { %v220_v48 = vsel %vm44_vm0, %v211_v47, 0.0  ;;  %v209_v49 = vld [vmem:[#allocation2] sm:$0xff] }
 0x127   :  { %221 = vadd.xlane.f32.xlu1 %v220_v48  ;;  %v214_v50 = vsel %vm44_vm0, %v209_v49, 0.0  ;;  %v212_v51 = vld [vmem:[#allocation2 + $0x18] sm:$0xff] }
 0x128   :  { %215 = vadd.xlane.f32.xlu0 %v214_v50  ;;  %v210_v52 = vld [vmem:[#allocation2 + $0x8] sm:$0xff]  ;;  %v223_v53 = vsel %vm44_vm0, %v212_v51, 0.0 }
 0x129   :  { %v217_v54 = vsel %vm44_vm0, %v210_v52, 0.0 }
 0x12b   :  { %224 = vadd.xlane.f32.xlu1 %v223_v53 }
 0x12c   :  { %218 = vadd.xlane.f32.xlu0 %v217_v54 }
 0x1b4   :  { %v222_v55 = vpop.xlane.xlu1 %221 }
 0x1b5   :  { %229 = vst.msk [vmem:[%s392_s2 + $0x10] sm:$0xff] %vm226_vm5, %v222_v55  ;;  %v216_v56 = vpop.xlane.xlu0 %215 }
 0x1b6   :  { %227 = vst.msk [vmem:[%s392_s2] sm:$0xff] %vm226_vm5, %v216_v56 }
 0x1b8   :  { %v225_v57 = vpop.xlane.xlu1 %224 }
 0x1b9   :  { %230 = vst.msk [vmem:[%s392_s2 + $0x18] sm:$0xff] %vm226_vm5, %v225_v57  ;;  %v219_v58 = vpop.xlane.xlu0 %218 }
 0x1ba   :  { %228 = vst.msk [vmem:[%s392_s2 + $0x8] sm:$0xff] %vm226_vm5, %v219_v58 }
 0x1bb   :  { %235 = vsyncpa [#allocation4], 1 }
 0x1bc   :  { %236 = vsyncpa [#allocation6], 1 }

</bundles_post_ra>
